<compile_context>
chip_gen: v7x
topology: tpu7x:2x2x1
jax: 0.10.0
libtpu: 0.0.40
codegen_flags: <defaults>
</compile_context>

<pallas_src>
import functools

import jax
import jax.numpy as jnp
from jax.experimental import pallas as pl
from jax.experimental.pallas import tpu as pltpu


def _classic_attention_kernel(x_ref, wha_ref, bha_ref, w1_ref, o_ref, *, nb, t):
    # x_ref:  (nb*t, D)  bf16  -- nb batch elements, time-flattened rows
    # wha_ref:(D, E)     bf16  -- fc_ha weight, stored (in, out)
    # bha_ref:(1, E)     f32   -- fc_ha bias
    # w1_ref: (1, E)     f32   -- fc_1 weight as a row (fc_1 bias is a softmax no-op)
    # o_ref:  (nb, t)    f32   -- softmax attention weights, T on the lane axis
    e_dim = wha_ref.shape[1]

    # ha = tanh(x @ W_ha + b_ha): one large-M MXU matmul, f32 accumulate.
    ha = jnp.tanh(
        jnp.dot(x_ref[...], wha_ref[...], preferred_element_type=jnp.float32)
        + bha_ref[...]
    )                                                    # (nb*t, E) f32

    # fc_1 as VPU multiply + XLU lane reduce (avoids an N=1 MXU matmul).
    ha3 = ha.reshape(nb, t, e_dim)                       # layout no-op (t % 8 == 0, f32)
    alp = jnp.sum(ha3 * w1_ref[...], axis=-1)            # (nb, t)

    # softmax over the time axis (lane axis), per batch element.
    m = jnp.max(alp, axis=-1, keepdims=True)             # (nb, 1)
    p = jnp.exp(alp - m)
    s = jnp.sum(p, axis=-1, keepdims=True)               # (nb, 1)
    o_ref[...] = (p * pl.reciprocal(s, approx=True)).astype(o_ref.dtype)


def _pick_batch_block(B, T, D, itemsize):
    """Pick NB batch elements per grid step.

    Targets NB*T >= ~512 matmul rows (fills the MXU M-dim on v5e/v6e/v7x) while
    keeping the x block <= 8 MiB so the pipeline's double buffering (~16 MiB)
    fits comfortably inside v7x's 32 MiB scoped VMEM. The output block is
    (NB, T), so NB must equal B or be a multiple of 8 (BlockSpec tiling rule).
    """
    target_rows = 512
    x_block_budget = 8 << 20
    cap = min(
        B,
        max(1, target_rows // max(T, 1)),
        max(1, x_block_budget // max(1, T * D * itemsize)),
    )
    for nb in range(cap, 0, -1):
        if B % nb == 0 and (nb == B or nb % 8 == 0):
            return nb
    return B  # single big block: always layout-legal


def classic_attention(x, w_ha, b_ha, w_1, b_1):
    """x: (B, T, D) float32. Returns softmax attention weights (B, T, 1)."""
    B, T, D = x.shape
    E = w_ha.shape[1]
    del b_1  # softmax(x + c) == softmax(x): the fc_1 bias cannot affect the output.

    if T % 8 != 0:
        raise ValueError("This kernel assumes T is a multiple of 8 (sublane tile).")

    nb = _pick_batch_block(B, T, D, itemsize=2)  # bf16 x
    grid = (B // nb,)
    rows = nb * T

    # bf16 halves HBM traffic on the dominant x read; f32 accumulate in-kernel.
    x_flat = x.reshape(B * T, D).astype(jnp.bfloat16)
    w_ha_bf = w_ha.astype(jnp.bfloat16)
    b_ha2 = b_ha.reshape(1, E).astype(jnp.float32)
    w1_row = w_1.reshape(1, E).astype(jnp.float32)

    kernel = functools.partial(_classic_attention_kernel, nb=nb, t=T)

    out2d = pl.pallas_call(
        kernel,
        out_shape=jax.ShapeDtypeStruct((B, T), jnp.float32),
        grid_spec=pltpu.PrefetchScalarGridSpec(
            num_scalar_prefetch=0,
            grid=grid,
            in_specs=[
                # NB*T rows of the flattened (B*T, D) input per grid step.
                pl.BlockSpec((rows, D), lambda g: (g, 0)),
                # weights / biases: full arrays, same block every step.
                pl.BlockSpec((D, E), lambda g: (0, 0)),
                pl.BlockSpec((1, E), lambda g: (0, 0)),
                pl.BlockSpec((1, E), lambda g: (0, 0)),
            ],
            # Lane-dense output: (NB, T) block with T on the lane axis.
            out_specs=pl.BlockSpec((nb, T), lambda g: (g, 0)),
        ),
        compiler_params=pltpu.CompilerParams(
            dimension_semantics=("parallel",)
        ),
    )(x_flat, w_ha_bf, b_ha2, w1_row)

    return out2d.reshape(B, T, 1).astype(x.dtype)


if __name__ == "__main__":
    # Small shapes consistent with the module: batch=2, seq=8,
    # input_dim=32, embed_dim=16.
    B, T, D, E = 2, 8, 32, 16

    key = jax.random.PRNGKey(0)
    k_x, k_wha, k_bha, k_w1, k_b1 = jax.random.split(key, 5)

    x = jax.random.normal(k_x, (B, T, D), dtype=jnp.float32)

    # Deterministic parameter init (shapes follow nn.Linear; stored as (in, out)).
    w_ha = jax.random.normal(k_wha, (D, E), dtype=jnp.float32) * 0.1
    b_ha = jax.random.normal(k_bha, (E,), dtype=jnp.float32) * 0.1
    w_1 = jax.random.normal(k_w1, (E, 1), dtype=jnp.float32) * 0.1
    b_1 = jax.random.normal(k_b1, (1,), dtype=jnp.float32) * 0.1

    out = classic_attention(x, w_ha, b_ha, w_1, b_1)
    out = jax.block_until_ready(out)

    # Reference in plain JAX (f32) to sanity-check semantics.
    ha_ref = jnp.tanh(x @ w_ha + b_ha)
    alp_ref = ha_ref @ w_1 + b_1
    al_ref = jax.nn.softmax(alp_ref, axis=1)

    assert out.shape == (B, T, 1)
    # Tolerance accounts for bf16 inputs + approx reciprocal (measured error ~5e-4).
    assert jnp.allclose(out, al_ref, atol=3e-3, rtol=1e-2)
    print("KERNEL_OK")
</pallas_src>

<mosaic_0001>
module attributes {stable_mosaic.version = 11 : i64} {
  func.func @_classic_attention_kernel(%arg0: i32, %arg1: memref<16x32xbf16, #tpu.memory_space<vmem>>, %arg2: memref<32x16xbf16, #tpu.memory_space<vmem>>, %arg3: memref<1x16xf32, #tpu.memory_space<vmem>>, %arg4: memref<1x16xf32, #tpu.memory_space<vmem>>, %arg5: memref<2x8xf32, #tpu.memory_space<vmem>>) attributes {dimension_semantics = [#tpu.dimension_semantics<parallel>], iteration_bounds = array<i64: 1>, scalar_prefetch = 0 : i64, scratch_operands = 0 : i64, tpu.core_type = #tpu.core_type<tc>, window_params = [{transform_indices = @transform_0, window_bounds = array<i64: 16, 32>}, {pipeline_mode = #tpu.pipeline_mode<synchronous>, transform_indices = @transform_1, window_bounds = array<i64: 32, 16>}, {pipeline_mode = #tpu.pipeline_mode<synchronous>, transform_indices = @transform_2, window_bounds = array<i64: 1, 16>}, {pipeline_mode = #tpu.pipeline_mode<synchronous>, transform_indices = @transform_3, window_bounds = array<i64: 1, 16>}, {transform_indices = @transform_4, window_bounds = array<i64: 2, 8>}]} {
    %c0 = arith.constant 0 : index
    %c0_0 = arith.constant 0 : index
    %0 = vector.load %arg1[%c0, %c0_0] : memref<16x32xbf16, #tpu.memory_space<vmem>>, vector<16x32xbf16>
    %c0_1 = arith.constant 0 : index
    %c0_2 = arith.constant 0 : index
    %1 = vector.load %arg2[%c0_1, %c0_2] : memref<32x16xbf16, #tpu.memory_space<vmem>>, vector<32x16xbf16>
    %cst = arith.constant dense<0.000000e+00> : vector<16x16xf32>
    %2 = tpu.matmul %0, %1, %cst {dimension_numbers = #tpu.dot_dimension_numbers<[1], [0], [0], [1], [0, 0, 1, 1], [], []>} : vector<16x32xbf16>, vector<32x16xbf16>, vector<16x16xf32> -> vector<16x16xf32>
    %c0_3 = arith.constant 0 : index
    %c0_4 = arith.constant 0 : index
    %3 = vector.load %arg3[%c0_3, %c0_4] : memref<1x16xf32, #tpu.memory_space<vmem>>, vector<1x16xf32>
    %4 = vector.broadcast %3 : vector<1x16xf32> to vector<16x16xf32>
    %5 = arith.addf %2, %4 : vector<16x16xf32>
    %6 = math.tanh %5 : vector<16x16xf32>
    %7 = vector.shape_cast %6 : vector<16x16xf32> to vector<2x8x16xf32>
    %c0_5 = arith.constant 0 : index
    %c0_6 = arith.constant 0 : index
    %8 = vector.load %arg4[%c0_5, %c0_6] : memref<1x16xf32, #tpu.memory_space<vmem>>, vector<1x16xf32>
    %9 = vector.shape_cast %8 : vector<1x16xf32> to vector<1x1x16xf32>
    %10 = vector.broadcast %9 : vector<1x1x16xf32> to vector<2x8x16xf32>
    %11 = arith.mulf %7, %10 : vector<2x8x16xf32>
    %cst_7 = arith.constant dense<0.000000e+00> : vector<2x8xf32>
    %12 = vector.multi_reduction <add>, %11, %cst_7 [2] : vector<2x8x16xf32> to vector<2x8xf32>
    %cst_8 = arith.constant dense<0xFF800000> : vector<2xf32>
    %13 = vector.multi_reduction <maximumf>, %12, %cst_8 [1] : vector<2x8xf32> to vector<2xf32>
    %14 = vector.shape_cast %13 : vector<2xf32> to vector<2x1xf32>
    %15 = vector.broadcast %14 : vector<2x1xf32> to vector<2x8xf32>
    %16 = arith.subf %12, %15 : vector<2x8xf32>
    %17 = math.exp %16 : vector<2x8xf32>
    %cst_9 = arith.constant dense<0.000000e+00> : vector<2xf32>
    %18 = vector.multi_reduction <add>, %17, %cst_9 [1] : vector<2x8xf32> to vector<2xf32>
    %19 = vector.shape_cast %18 : vector<2xf32> to vector<2x1xf32>
    %20 = tpu.reciprocal %19 {approx = true} : vector<2x1xf32> -> vector<2x1xf32>
    %21 = vector.broadcast %20 : vector<2x1xf32> to vector<2x8xf32>
    %22 = arith.mulf %17, %21 : vector<2x8xf32>
    %c0_10 = arith.constant 0 : index
    %c0_11 = arith.constant 0 : index
    %23 = vector.load %arg5[%c0_10, %c0_11] : memref<2x8xf32, #tpu.memory_space<vmem>>, vector<2x8xf32>
    tpu.vector_store %arg5[%c0_10, %c0_11], %22 {strides = array<i32>} : memref<2x8xf32, #tpu.memory_space<vmem>>, vector<2x8xf32>,
    return
  }
  func.func @transform_0(%arg0: i32) -> (i32, i32) {
    %c0_i32 = arith.constant 0 : i32
    %c0_i32_0 = arith.constant 0 : i32
    return %arg0, %c0_i32 : i32, i32
  }
  func.func @transform_1(%arg0: i32) -> (i32, i32) {
    %c0_i32 = arith.constant 0 : i32
    %c0_i32_0 = arith.constant 0 : i32
    %c0_i32_1 = arith.constant 0 : i32
    return %c0_i32, %c0_i32_0 : i32, i32
  }
  func.func @transform_2(%arg0: i32) -> (i32, i32) {
    %c0_i32 = arith.constant 0 : i32
    %c0_i32_0 = arith.constant 0 : i32
    %c0_i32_1 = arith.constant 0 : i32
    return %c0_i32, %c0_i32_0 : i32, i32
  }
  func.func @transform_3(%arg0: i32) -> (i32, i32) {
    %c0_i32 = arith.constant 0 : i32
    %c0_i32_0 = arith.constant 0 : i32
    %c0_i32_1 = arith.constant 0 : i32
    return %c0_i32, %c0_i32_0 : i32, i32
  }
  func.func @transform_4(%arg0: i32) -> (i32, i32) {
    %c0_i32 = arith.constant 0 : i32
    %c0_i32_0 = arith.constant 0 : i32
    return %arg0, %c0_i32 : i32, i32
  }
}

</mosaic_0001>

<bundles_post_ra>
// kernel: tpu_custom_call.1
= control target key start
LH: loop header
LB: loop body
LE: loop exit
PB: predicated region body
PF: predicated region fallthrough
CT: control target
= control target key end

     0   :  { %v276_v1 = vmov 0.0   ;;  %vm277_vm0 = vmmov 0   ;;  %s338_s0 = inlined_call_operand.vmem [shape: bf16[16,32], index: 0, kind: input, shape index: {}]   ;;  %s339_s1 = inlined_call_operand.vmem [shape: bf16[32,16], index: 1, kind: input, shape index: {}]   ;;  %s340_s2 = inlined_call_operand.vmem [shape: f32[1,16], index: 2, kind: input, shape index: {}]   ;;  %s341_s3 = inlined_call_operand.vmem [shape: f32[1,16], index: 3, kind: input, shape index: {}]   ;;  %s342_s4 = inlined_call_operand.hbm [shape: f32[2,8], index: 4, kind: output, shape index: {}]  }
   0x1   :  { %v239_v0 = vld [vmem:[%s339_s1] sm:$0xff]   ;;  %225 = vmatprep.subr.bf16.mxu0 %v276_v1  ;;  %v240_v2 = vld [vmem:[%s339_s1 + $0x8] sm:$0xff]   ;;  %229 = vmatprep.mubr.msk.bf16.mxu0 %vm277_vm0, %v276_v1 }
   0x2   :  { %226 = vmatpush3.bf16.msra.mxu0 %v239_v0 }
   0x3   :  { %227 = vmatprep.subr.bf16.mxu0 %v276_v1 }
   0x4   :  { %9 = vsyncpa [#allocation3], 0  ;;  %v241_v3 = vld [vmem:[%s338_s0] sm:$0xff]   ;;  %vm49_vm1 = vcmask 261120   ;;  %vm105_vm2 = vcmask 130048   ;;  %v114_v18 = vlaneseq  ;;  %vm124_vm3 = vcmask 1041409  }
   0x5   :  { %v216_v4 = vld [vmem:[%s340_s2] ss:$0 sm:$0xff]  ;;  %vm127_vm4 = vcmask 58368   ;;  %v278_v28 = vmov 0   ;;  %s279_s0 = smov [#allocation2]  }
   0x6   :  { %228 = vmatpush3.bf16.msra.mxu0 %v240_v2  ;;  %v221_v11 = vld [vmem:[%s341_s3] ss:$0 sm:$0xff]  ;;  %v115_v19 = vand.u32 127, %v114_v18  ;;  %v117_v20 = vshrl.u32 %v114_v18, 7  ;;  %238 = vset.pattern.permute.xlu0 %v278_v28  ;;  %s208_s2 = sshll.u32 %s279_s0, 4  ;;  %s209_s2 = int_to_ptr.vmem [resolvable:$true] %s208_s2 }
   0x7   :  { %237 = vset.pattern.permute.xlu1 %v278_v28  ;;  %s252_s3 = scalar_lea.vmem %s209_s2, 32  ;;  %p257_p1 = scmp.lt.s32.totalorder %s209_s2, %s209_s2 }
   0x8   :  { %v118_v22 = vsub.s32 %v115_v19, %v117_v20  ;;  %v134_v29 = vsub.s32 0, %v117_v20  ;;  %v138_v30 = vsub.s32 1, %v117_v20  ;;  %p253_p0 = scmp.ne.s32.totalorder %s209_s2, %s252_s3  ;;  %p258_p2 = scmp.lt.s32.totalorder %s252_s3, %s252_s3 }
   0x9   :  { %230 = vmatmul.mubr.msk.bf16.vlgmr.msra.gmra.mrb[0].mxu0 %vm49_vm1, %v241_v3 }
   0xa   :  { %p259_p3 = por %p258_p2, %p257_p1 }
   0xc   :  { %p260_p4 = pnand %p259_p3, %p253_p0 }
  0xdc   :  { %v87_v5 = vpop.f32.mrb[0].mxu0 }
  0xdd   :  { %v88_v6 = vadd.f32 %v216_v4, %v87_v5  ;;  %v231_v7 = vpop.f32.mrb[1].mxu0 }
  0xde   :  { %v90_v8 = vpop.f32.mrb[2].mxu0 }
  0xdf   :  { %242 = vtanh.f32 %v88_v6  ;;  %v91_v9 = vadd.f32 %v216_v4, %v90_v8  ;;  %v232_v10 = vpop.f32.mrb[3].mxu0 }
  0xe1   :  { %244 = vtanh.f32 %v91_v9 }
  0xe9   :  { %v243_v12 = vpop.eup %242 }
  0xea   :  { %v103_v13 = vmul.f32 %v243_v12, %v221_v11 }
  0xeb   :  { %v245_v14 = vpop.eup %244 }
  0xec   :  { %v106_v15 = vsel %vm105_vm2, %v103_v13, 0.0  ;;  %v104_v16 = vmul.f32 %v245_v14, %v221_v11 }
  0xed   :  { %107 = vadd.xlane.f32.xlu0 %v106_v15 }
  0xee   :  { %v109_v17 = vsel %vm105_vm2, %v104_v16, 0.0 }
  0xf1   :  { %110 = vadd.xlane.f32.xlu0 %v109_v17 }
 0x17a   :  { %v108_v21 = vpop.xlane.xlu0 %107 }
 0x17b   :  { %v119_v24 = vrot.slane %v108_v21, %v118_v22 }
 0x17e   :  { %v111_v23 = vpop.xlane.xlu0 %110 }
 0x17f   :  { %v123_v25 = vrot.slane %v111_v23, %v118_v22 }
 0x181   :  { %v125_v26 = vsel %vm124_vm3, %v123_v25, %v119_v24 }
 0x182   :  { %v128_v27 = vsel %vm127_vm4, %v125_v26, -inf }
 0x183   :  { %129 = vmax.xlane.f32.xlu1 %v128_v27 }
 0x210   :  { %v130_v31 = vpop.xlane.xlu1 %129 }
 0x211   :  { %v135_v32 = vrot.slane %v130_v31, %v134_v29  ;;  %v139_v33 = vrot.slane %v130_v31, %v138_v30 }
 0x213   :  { %v142_v34 = vsub.f32 %v108_v21, %v135_v32  ;;  %v143_v35 = vsub.f32 %v111_v23, %v139_v33 }
 0x215   :  { %v144_v36 = vmul.f32 1.442695, %v142_v34  ;;  %v146_v37 = vmul.f32 1.442695, %v143_v35 }
 0x217   :  { %246 = vpow2.f32 %v144_v36 }
 0x218   :  { %248 = vpow2.f32 %v146_v37 }
 0x221   :  { %v247_v38 = vpop.eup %246 }
 0x222   :  { %v249_v39 = vpop.eup %248  ;;  %151 = vperm.xlu1 %237, %v247_v38  }
 0x223   :  { %154 = vperm.xlu0 %238, %v249_v39  }
 0x2a1   :  { %v152_v40 = vpop.permute.xlu1 %151 }
 0x2a2   :  { %v155_v41 = vpop.permute.xlu0 %154  ;;  %v159_v42 = vrot.slane %v152_v40, %v118_v22 }
 0x2a3   :  { %v163_v43 = vrot.slane %v155_v41, %v118_v22 }
 0x2a5   :  { %v164_v44 = vsel %vm124_vm3, %v163_v43, %v159_v42 }
 0x2a6   :  { %v166_v45 = vsel %vm127_vm4, %v164_v44, 0.0 }
 0x2a7   :  { %167 = vadd.xlane.f32.xlu1 %v166_v45 }
 0x334   :  { %v168_v46 = vpop.xlane.xlu1 %167 }
 0x335   :  { %250 = vrcp.f32 %v168_v46 }
 0x33f   :  { %v251_v47 = vpop.eup %250 }
 0x340   :  { %v174_v48 = vrot.slane %v251_v47, %v134_v29  ;;  %v178_v50 = vrot.slane %v251_v47, %v138_v30 }
 0x342   :  { %v181_v49 = vmul.f32 %v247_v38, %v174_v48  ;;  %v182_v51 = vmul.f32 %v249_v39, %v178_v50 }
 0x344   :  { %186 = vperm.xlu0 %238, %v181_v49  }
 0x348   :  { %189 = vperm.xlu0 %238, %v182_v51  }
 0x3c3   :  { %v187_v52 = vpop.permute.xlu0 %186 }
 0x3c4   :  { %v194_v54 = vrot.slane %v187_v52, %v118_v22 }
 0x3c7   :  { %v190_v53 = vpop.permute.xlu0 %189 }
 0x3c8   :  { %v198_v55 = vrot.slane %v190_v53, %v118_v22 }
 0x3ca   :  { %v199_v56 = vsel %vm124_vm3, %v198_v55, %v194_v54 }
 0x3cb   :  { %201 = vst.msk [vmem:[#allocation2] sm:$0x3] %vm127_vm4, %v199_v56 }
 0x3cc   :  { %263 = shalt.err (!%p260_p4)
}
 0x3cd   :  { %s264_s26 = scalar_lea.hbm %s342_s4, 32 }
 0x3ce   :  { %p265_p5 = scmp.ne.s32.totalorder %s342_s4, %s264_s26  ;;  %p268_p6 = scmp.lt.u32.totalorder %s264_s26, %s342_s4 }
 0x3d0   :  { %p270_p7 = pnand %p268_p6, %p265_p5 }
 0x3d2   :  { %273 = shalt.err (!%p270_p7)
}
 0x3d3   :  { %211 = dma.vmem_to_hbm [thread:$0]  %s209_s2, 32, %s342_s4, [#allocation3]  }
 0x3d4   :  { %274 = dma.done.wait [#allocation3], 32  }
 0x3d5   :  { %275 = vsyncadd [#allocation3], 4294967264 }
 0x3d6   :  { %215 = vsyncpa [#allocation3], 1 }

</bundles_post_ra>
